<compile_context>
chip_gen: v5e
topology: v5e:2x2
jax: 0.10.0
libtpu: 0.0.40
codegen_flags: <defaults>
</compile_context>

<pallas_src>
import jax
import jax.numpy as jnp
from jax.experimental import pallas as pl
from jax.experimental.pallas import tpu as pltpu


def _swd_kernel(p_ref, proj_ref, out_ref):
    two_n, _ = p_ref.shape
    n = two_n // 2
    k = proj_ref.shape[1]
    m = 2 * k

    # Fused projection: [2N, C] @ [C, K] -> [2N, K], f32 accumulation on MXU.
    q = jnp.dot(p_ref[...], proj_ref[...], preferred_element_type=jnp.float32)

    # Place the two projected sets side by side along lanes: (N, 2K).
    # Row slices [0:N) / [N:2N) are vreg-aligned; the sort below treats every
    # lane column independently, so both sets share one instruction stream.
    qs = jnp.concatenate([q[:n, :], q[n:, :]], axis=1)

    # Parity masks for the odd-even transposition network, hoisted out of the
    # unrolled pass loop (JAX does not CSE broadcasts).
    row = jax.lax.broadcasted_iota(jnp.int32, (n, m), 0)
    is_even_row = (row & 1) == 0
    top_even = is_even_row & (row < n - 1)            # pair tops, even passes
    bot_even = jnp.logical_not(is_even_row)           # pair bottoms, even passes
    top_odd = jnp.logical_not(is_even_row) & (row < n - 1)
    bot_odd = is_even_row & (row > 0)

    def compare_exchange(x, top, bot):
        # Row i sees its lower neighbor x[i+1] / upper neighbor x[i-1]
        # (cyclic roll; wrapped rows are masked out by `top`/`bot`).
        below = pltpu.roll(x, shift=n - 1, axis=0)    # x[(i+1) % n] at row i
        above = pltpu.roll(x, shift=1, axis=0)        # x[(i-1) % n] at row i
        return jnp.where(top, jnp.maximum(x, below),
                         jnp.where(bot, jnp.minimum(x, above), x))

    # N passes of the network = full descending sort along axis 0.  Statically
    # unrolled (N is small); the pass body is fully vectorized in registers.
    # TODO(synk): for large N switch to lax.fori_loop(..., unroll=True) or a
    # bitonic network to bound code size.
    for p in range(n):
        if p % 2 == 0:
            qs = compare_exchange(qs, top_even, bot_even)
        else:
            qs = compare_exchange(qs, top_odd, bot_odd)

    d = qs[:, :k] - qs[:, k:]
    out_ref[0, 0] = jnp.sum(d * d) / jnp.float32(n * k)


def sliced_wasserstein_discrepancy(p1, p2, key, mean=0.0, sd=1.0):
    """JAX/Pallas equivalent of SlicedWassersteinDiscrepancy.forward."""
    p1 = p1.astype(jnp.float32)
    p2 = p2.astype(jnp.float32)
    n, c = p1.shape
    assert p2.shape == (n, c)

    if c > 1:
        # dist.sample([C, 128]) with Normal(mean, sd), then column-normalize.
        proj = mean + sd * jax.random.normal(key, (c, 128), dtype=jnp.float32)
        proj = proj * jax.lax.rsqrt(jnp.sum(proj * proj, axis=0, keepdims=True))
    else:
        # C == 1: PyTorch skips the projection entirely.  Broadcasting the
        # single column into 128 identical lane columns keeps the kernel
        # lane-dense and yields an identical mean (identical columns).
        proj = jnp.ones((1, 128), dtype=jnp.float32)

    p_cat = jnp.concatenate([p1, p2], axis=0)         # [2N, C]

    out = pl.pallas_call(
        _swd_kernel,
        out_shape=jax.ShapeDtypeStruct((1, 1), jnp.float32),
        in_specs=[
            pl.BlockSpec(memory_space=pltpu.MemorySpace.VMEM),
            pl.BlockSpec(memory_space=pltpu.MemorySpace.VMEM),
        ],
        out_specs=pl.BlockSpec(memory_space=pltpu.MemorySpace.SMEM),
    )(p_cat, proj)
    return out[0, 0]


def _reference(p1, p2, key, mean=0.0, sd=1.0):
    """Pure-JAX reference (mirrors the PyTorch forward)."""
    p1 = p1.astype(jnp.float32)
    p2 = p2.astype(jnp.float32)
    if p1.shape[1] > 1:
        proj = mean + sd * jax.random.normal(key, (p1.shape[1], 128),
                                             dtype=jnp.float32)
        proj = proj * jax.lax.rsqrt(jnp.sum(proj * proj, axis=0, keepdims=True))
        p1 = p1 @ proj
        p2 = p2 @ proj
    p1 = -jnp.sort(-p1, axis=0)   # descending
    p2 = -jnp.sort(-p2, axis=0)
    return jnp.mean((p1 - p2) ** 2)


if __name__ == "__main__":
    key = jax.random.PRNGKey(0)
    k_p1, k_p2, k_proj = jax.random.split(key, 3)

    N, C = 8, 32                      # small [batch, features] inputs
    p1 = jax.random.normal(k_p1, (N, C), dtype=jnp.float32)
    p2 = jax.random.normal(k_p2, (N, C), dtype=jnp.float32)

    wdist = sliced_wasserstein_discrepancy(p1, p2, k_proj)
    wdist = jax.block_until_ready(wdist)

    ref = _reference(p1, p2, k_proj)
    assert jnp.allclose(wdist, ref, rtol=1e-5, atol=1e-5), (wdist, ref)

    print("KERNEL_OK")
</pallas_src>

<mosaic_0001>
module attributes {stable_mosaic.version = 11 : i64} {
  func.func @_swd_kernel(%arg0: memref<16x32xf32, #tpu.memory_space<vmem>>, %arg1: memref<32x128xf32, #tpu.memory_space<vmem>>, %arg2: memref<1x1xf32, #tpu.memory_space<smem>>) attributes {dimension_semantics = [], scalar_prefetch = 0 : i64, scratch_operands = 0 : i64, tpu.core_type = #tpu.core_type<tc>} {
    %c0 = arith.constant 0 : index
    %c0_0 = arith.constant 0 : index
    %0 = vector.load %arg0[%c0, %c0_0] : memref<16x32xf32, #tpu.memory_space<vmem>>, vector<16x32xf32>
    %c0_1 = arith.constant 0 : index
    %c0_2 = arith.constant 0 : index
    %1 = vector.load %arg1[%c0_1, %c0_2] : memref<32x128xf32, #tpu.memory_space<vmem>>, vector<32x128xf32>
    %cst = arith.constant dense<0.000000e+00> : vector<16x128xf32>
    %2 = tpu.matmul %0, %1, %cst {dimension_numbers = #tpu.dot_dimension_numbers<[1], [0], [0], [1], [0, 0, 1, 1], [], []>} : vector<16x32xf32>, vector<32x128xf32>, vector<16x128xf32> -> vector<16x128xf32>
    %3 = vector.extract_strided_slice %2 {offsets = [0, 0], sizes = [8, 128], strides = [1, 1]} : vector<16x128xf32> to vector<8x128xf32>
    %4 = vector.extract_strided_slice %2 {offsets = [8, 0], sizes = [8, 128], strides = [1, 1]} : vector<16x128xf32> to vector<8x128xf32>
    %5 = tpu.concatenate %3, %4 in 1 : vector<8x128xf32>, vector<8x128xf32> -> vector<8x256xf32>
    %6 = tpu.iota {dimensions = array<i32: 0>} : vector<8x256xi32>
    %c1_i32 = arith.constant 1 : i32
    %7 = vector.broadcast %c1_i32 : i32 to vector<8x256xi32>
    %8 = arith.andi %6, %7 : vector<8x256xi32>
    %c0_i32 = arith.constant 0 : i32
    %9 = vector.broadcast %c0_i32 : i32 to vector<8x256xi32>
    %10 = arith.cmpi eq, %8, %9 : vector<8x256xi32>
    %c7_i32 = arith.constant 7 : i32
    %11 = vector.broadcast %c7_i32 : i32 to vector<8x256xi32>
    %12 = arith.cmpi slt, %6, %11 : vector<8x256xi32>
    %13 = arith.andi %10, %12 : vector<8x256xi1>
    %cst_3 = arith.constant dense<true> : vector<8x256xi1>
    %14 = arith.xori %10, %cst_3 : vector<8x256xi1>
    %cst_4 = arith.constant dense<true> : vector<8x256xi1>
    %15 = arith.xori %10, %cst_4 : vector<8x256xi1>
    %c7_i32_5 = arith.constant 7 : i32
    %16 = vector.broadcast %c7_i32_5 : i32 to vector<8x256xi32>
    %17 = arith.cmpi slt, %6, %16 : vector<8x256xi32>
    %18 = arith.andi %15, %17 : vector<8x256xi1>
    %c0_i32_6 = arith.constant 0 : i32
    %19 = vector.broadcast %c0_i32_6 : i32 to vector<8x256xi32>
    %20 = arith.cmpi sgt, %6, %19 : vector<8x256xi32>
    %21 = arith.andi %10, %20 : vector<8x256xi1>
    %c7_i32_7 = arith.constant 7 : i32
    %22 = tpu.dynamic_rotate %5 by %c7_i32_7 dim 0 : vector<8x256xf32>, i32 -> vector<8x256xf32>
    %c1_i32_8 = arith.constant 1 : i32
    %23 = tpu.dynamic_rotate %5 by %c1_i32_8 dim 0 : vector<8x256xf32>, i32 -> vector<8x256xf32>
    %24 = arith.maximumf %5, %22 : vector<8x256xf32>
    %25 = arith.minimumf %5, %23 : vector<8x256xf32>
    %26 = arith.select %14, %25, %5 : vector<8x256xi1>, vector<8x256xf32>
    %27 = arith.select %13, %24, %26 : vector<8x256xi1>, vector<8x256xf32>
    %c7_i32_9 = arith.constant 7 : i32
    %28 = tpu.dynamic_rotate %27 by %c7_i32_9 dim 0 : vector<8x256xf32>, i32 -> vector<8x256xf32>
    %c1_i32_10 = arith.constant 1 : i32
    %29 = tpu.dynamic_rotate %27 by %c1_i32_10 dim 0 : vector<8x256xf32>, i32 -> vector<8x256xf32>
    %30 = arith.maximumf %27, %28 : vector<8x256xf32>
    %31 = arith.minimumf %27, %29 : vector<8x256xf32>
    %32 = arith.select %21, %31, %27 : vector<8x256xi1>, vector<8x256xf32>
    %33 = arith.select %18, %30, %32 : vector<8x256xi1>, vector<8x256xf32>
    %c7_i32_11 = arith.constant 7 : i32
    %34 = tpu.dynamic_rotate %33 by %c7_i32_11 dim 0 : vector<8x256xf32>, i32 -> vector<8x256xf32>
    %c1_i32_12 = arith.constant 1 : i32
    %35 = tpu.dynamic_rotate %33 by %c1_i32_12 dim 0 : vector<8x256xf32>, i32 -> vector<8x256xf32>
    %36 = arith.maximumf %33, %34 : vector<8x256xf32>
    %37 = arith.minimumf %33, %35 : vector<8x256xf32>
    %38 = arith.select %14, %37, %33 : vector<8x256xi1>, vector<8x256xf32>
    %39 = arith.select %13, %36, %38 : vector<8x256xi1>, vector<8x256xf32>
    %c7_i32_13 = arith.constant 7 : i32
    %40 = tpu.dynamic_rotate %39 by %c7_i32_13 dim 0 : vector<8x256xf32>, i32 -> vector<8x256xf32>
    %c1_i32_14 = arith.constant 1 : i32
    %41 = tpu.dynamic_rotate %39 by %c1_i32_14 dim 0 : vector<8x256xf32>, i32 -> vector<8x256xf32>
    %42 = arith.maximumf %39, %40 : vector<8x256xf32>
    %43 = arith.minimumf %39, %41 : vector<8x256xf32>
    %44 = arith.select %21, %43, %39 : vector<8x256xi1>, vector<8x256xf32>
    %45 = arith.select %18, %42, %44 : vector<8x256xi1>, vector<8x256xf32>
    %c7_i32_15 = arith.constant 7 : i32
    %46 = tpu.dynamic_rotate %45 by %c7_i32_15 dim 0 : vector<8x256xf32>, i32 -> vector<8x256xf32>
    %c1_i32_16 = arith.constant 1 : i32
    %47 = tpu.dynamic_rotate %45 by %c1_i32_16 dim 0 : vector<8x256xf32>, i32 -> vector<8x256xf32>
    %48 = arith.maximumf %45, %46 : vector<8x256xf32>
    %49 = arith.minimumf %45, %47 : vector<8x256xf32>
    %50 = arith.select %14, %49, %45 : vector<8x256xi1>, vector<8x256xf32>
    %51 = arith.select %13, %48, %50 : vector<8x256xi1>, vector<8x256xf32>
    %c7_i32_17 = arith.constant 7 : i32
    %52 = tpu.dynamic_rotate %51 by %c7_i32_17 dim 0 : vector<8x256xf32>, i32 -> vector<8x256xf32>
    %c1_i32_18 = arith.constant 1 : i32
    %53 = tpu.dynamic_rotate %51 by %c1_i32_18 dim 0 : vector<8x256xf32>, i32 -> vector<8x256xf32>
    %54 = arith.maximumf %51, %52 : vector<8x256xf32>
    %55 = arith.minimumf %51, %53 : vector<8x256xf32>
    %56 = arith.select %21, %55, %51 : vector<8x256xi1>, vector<8x256xf32>
    %57 = arith.select %18, %54, %56 : vector<8x256xi1>, vector<8x256xf32>
    %c7_i32_19 = arith.constant 7 : i32
    %58 = tpu.dynamic_rotate %57 by %c7_i32_19 dim 0 : vector<8x256xf32>, i32 -> vector<8x256xf32>
    %c1_i32_20 = arith.constant 1 : i32
    %59 = tpu.dynamic_rotate %57 by %c1_i32_20 dim 0 : vector<8x256xf32>, i32 -> vector<8x256xf32>
    %60 = arith.maximumf %57, %58 : vector<8x256xf32>
    %61 = arith.minimumf %57, %59 : vector<8x256xf32>
    %62 = arith.select %14, %61, %57 : vector<8x256xi1>, vector<8x256xf32>
    %63 = arith.select %13, %60, %62 : vector<8x256xi1>, vector<8x256xf32>
    %c7_i32_21 = arith.constant 7 : i32
    %64 = tpu.dynamic_rotate %63 by %c7_i32_21 dim 0 : vector<8x256xf32>, i32 -> vector<8x256xf32>
    %c1_i32_22 = arith.constant 1 : i32
    %65 = tpu.dynamic_rotate %63 by %c1_i32_22 dim 0 : vector<8x256xf32>, i32 -> vector<8x256xf32>
    %66 = arith.maximumf %63, %64 : vector<8x256xf32>
    %67 = arith.minimumf %63, %65 : vector<8x256xf32>
    %68 = arith.select %21, %67, %63 : vector<8x256xi1>, vector<8x256xf32>
    %69 = arith.select %18, %66, %68 : vector<8x256xi1>, vector<8x256xf32>
    %70 = vector.extract_strided_slice %69 {offsets = [0, 0], sizes = [8, 128], strides = [1, 1]} : vector<8x256xf32> to vector<8x128xf32>
    %71 = vector.extract_strided_slice %69 {offsets = [0, 128], sizes = [8, 128], strides = [1, 1]} : vector<8x256xf32> to vector<8x128xf32>
    %72 = arith.subf %70, %71 : vector<8x128xf32>
    %73 = arith.mulf %72, %72 : vector<8x128xf32>
    %74 = vector.shape_cast %73 : vector<8x128xf32> to vector<1x8x128xf32>
    %cst_23 = arith.constant dense<0.000000e+00> : vector<1xf32>
    %75 = vector.multi_reduction <add>, %74, %cst_23 [1, 2] : vector<1x8x128xf32> to vector<1xf32>
    %76 = vector.shape_cast %75 : vector<1xf32> to vector<1x1x1xf32>
    %77 = vector.extract %76[0, 0, 0] : f32 from vector<1x1x1xf32>
    %cst_24 = arith.constant 1.024000e+03 : f32
    %78 = arith.divf %77, %cst_24 : f32
    %c0_25 = arith.constant 0 : index
    %c0_26 = arith.constant 0 : index
    %79 = memref.load %arg2[%c0_25, %c0_26] : memref<1x1xf32, #tpu.memory_space<smem>>
    memref.store %78, %arg2[%c0_25, %c0_26] : memref<1x1xf32, #tpu.memory_space<smem>>
    return
  }
}

</mosaic_0001>

<bundles_post_ra>
// kernel: tpu_custom_call.1
= control target key start
LH: loop header
LB: loop body
LE: loop exit
PB: predicated region body
PF: predicated region fallthrough
CT: control target
= control target key end

     0   :  { %7 = vsyncpa [#allocation3], 0  ;;  %s435_s0 = inlined_call_operand.hbm [shape: f32[16,32], index: 0, kind: input, shape index: {}]   ;;  %s436_s1 = inlined_call_operand.hbm [shape: f32[32,128], index: 1, kind: input, shape index: {}]   ;;  %s437_s2 = inlined_call_operand.hbm [shape: f32[1,1], index: 2, kind: output, shape index: {}]  }
   0x1   :  { %8 = vsyncpa [#allocation6], 0 }
   0x2   :  { %9 = vsyncpa [#allocation4], 0  ;;  %s14_s11 = sshll.u32 %s435_s0, 4  ;;  %s310_s12 = smov [#allocation2]   ;;  %s15_s11 = int_to_ptr.hbm [resolvable:$true] %s14_s11 }
   0x3   :  { %s16_s13 = sshll.u32 %s310_s12, 4  ;;  %s27_s16 = sshll.u32 %s436_s1, 4  ;;  %s17_s13 = int_to_ptr.vmem [resolvable:$true] %s16_s13  ;;  %s28_s16 = int_to_ptr.hbm [resolvable:$true] %s27_s16 }
   0x4   :  { %s311_s17 = smov 128   ;;  %s312_s18 = smov 8  }
   0x5   :  { %22 = dma.hbm_to_vmem [thread:$0]  %s15_s11, 256, %s17_s13, [#allocation3], %s311_s17, %s311_s17, %s312_s18  }
   0x6   :  { %s313_s19 = smov [#allocation5]  }
   0x7   :  { %s29_s20 = sshll.u32 %s313_s19, 4  ;;  %s30_s20 = int_to_ptr.vmem [resolvable:$true] %s29_s20 }
   0x8   :  { %35 = dma.hbm_to_vmem [thread:$0]  %s28_s16, 512, %s30_s20, [#allocation6], %s311_s17, %s311_s17, %s312_s18  }
   0x9   :  { %304 = dma.done.wait [#allocation3], 256  }
   0xa   :  { %305 = vsyncadd [#allocation3], 4294967040 }
   0xb   :  { %306 = dma.done.wait [#allocation6], 512  }
   0xc   :  { %307 = vsyncadd [#allocation6], 4294966784  ;;  %v49_v0 = vld [vmem:[#allocation5 + $0x18] sm:$0xff]  ;;  %v48_v1 = vld [vmem:[#allocation5 + $0x10] sm:$0xff]  ;;  %vm50_vm0 = vcmask 261120   ;;  %v80_v6 = vlaneseq  ;;  %vm314_vm3 = vmmov 1  }
   0xd   :  { %69 = vmatpush.msra.mxu0 %v49_v0  ;;  %227 = vmatpush.msra.mxu1 %v49_v0  ;;  %v47_v2 = vld [vmem:[#allocation5 + $0x8] sm:$0xff]  ;;  %v46_v3 = vld [vmem:[#allocation5] sm:$0xff]  ;;  %v44_v4 = vld [vmem:[#allocation2] sm:$0xff]  ;;  %s213_s21 = sshll.u32 %s437_s2, 4  ;;  %s316_s25 = smov [#allocation7]   ;;  %s214_s21 = int_to_ptr.hbm [resolvable:$true] %s213_s21 }
   0xe   :  { %v45_v5 = vld [vmem:[#allocation2 + $0x8] sm:$0xff]  ;;  %v81_v7 = vshrl.u32 %v80_v6, 7 }
   0xf   :  { %70 = vmatpush.msra.mxu0 %v48_v1  ;;  %228 = vmatpush.msra.mxu1 %v48_v1 }
  0x10   :  { %v82_v8 = vand.u32 1, %v81_v7  ;;  %vm84_vm2 = vcmp.lt.s32.totalorder %v81_v7, 7  ;;  %vm88_vm6 = vcmp.gt.s32.totalorder %v81_v7, 0 }
  0x11   :  { %71 = vmatpush.msra.mxu0 %v47_v2  ;;  %229 = vmatpush.msra.mxu1 %v47_v2 }
  0x12   :  { %vm338_vm1 = vcmp.eq.s32.totalorder %v82_v8, 0 }
  0x13   :  { %72 = vmatpush.msra.mxu0 %v46_v3  ;;  %230 = vmatpush.msra.mxu1 %v46_v3  ;;  %vm344_vm4 = vmxor %vm338_vm1, %vm314_vm3 }
  0x14   :  { %225 = vmatmul.msk.f32.vlgmr.msra.gmra.mxu0 %vm50_vm0, %v44_v4  ;;  %226 = vmatmul.msk.f32.vlgmr.msra.gmra.mxu1 %vm50_vm0, %v45_v5  ;;  %vm351_vm5 = vmand %vm338_vm1, %vm84_vm2 }
  0x15   :  { %vm365_vm7 = vmand %vm338_vm1, %vm88_vm6 }
  0x16   :  { %vm372_vm8 = vmand %vm344_vm4, %vm84_vm2 }
  0x91   :  { %v74_v10 = vpop.f32.mrf.mxu0  ;;  %v77_v11 = vpop.f32.mrf.mxu1 }
  0x92   :  { %v90_v12 = vrot.slane %v74_v10, 1  ;;  %v92_v13 = vrot.slane %v74_v10, 7  ;;  %v91_v14 = vrot.slane %v77_v11, 1  ;;  %v93_v15 = vrot.slane %v77_v11, 7 }
  0x94   :  { %v94_v18 = vmax.f32 %v74_v10, %v90_v12  ;;  %v96_v19 = vmin.f32 %v74_v10, %v92_v13  ;;  %v95_v20 = vmax.f32 %v77_v11, %v91_v14  ;;  %v97_v21 = vmin.f32 %v77_v11, %v93_v15 }
  0x96   :  { %v98_v22 = vsel %vm344_vm4, %v96_v19, %v74_v10  ;;  %v99_v23 = vsel %vm344_vm4, %v97_v21, %v77_v11 }
  0x97   :  { %v100_v24 = vsel %vm351_vm5, %v94_v18, %v98_v22  ;;  %v101_v25 = vsel %vm351_vm5, %v95_v20, %v99_v23 }
  0x98   :  { %v102_v26 = vrot.slane %v100_v24, 1  ;;  %v104_v27 = vrot.slane %v100_v24, 7  ;;  %v103_v28 = vrot.slane %v101_v25, 1  ;;  %v105_v29 = vrot.slane %v101_v25, 7 }
  0x9a   :  { %v106_v32 = vmax.f32 %v100_v24, %v102_v26  ;;  %v108_v33 = vmin.f32 %v100_v24, %v104_v27  ;;  %v107_v34 = vmax.f32 %v101_v25, %v103_v28  ;;  %v109_v35 = vmin.f32 %v101_v25, %v105_v29 }
  0x9c   :  { %v110_v36 = vsel %vm365_vm7, %v108_v33, %v100_v24  ;;  %v111_v37 = vsel %vm365_vm7, %v109_v35, %v101_v25 }
  0x9d   :  { %v112_v38 = vsel %vm372_vm8, %v106_v32, %v110_v36  ;;  %v113_v39 = vsel %vm372_vm8, %v107_v34, %v111_v37 }
  0x9e   :  { %v114_v40 = vrot.slane %v112_v38, 1  ;;  %v116_v41 = vrot.slane %v112_v38, 7  ;;  %v115_v42 = vrot.slane %v113_v39, 1  ;;  %v117_v43 = vrot.slane %v113_v39, 7 }
  0xa0   :  { %v118_v44 = vmax.f32 %v112_v38, %v114_v40  ;;  %v120_v45 = vmin.f32 %v112_v38, %v116_v41  ;;  %v119_v46 = vmax.f32 %v113_v39, %v115_v42  ;;  %v121_v47 = vmin.f32 %v113_v39, %v117_v43 }
  0xa2   :  { %v122_v48 = vsel %vm344_vm4, %v120_v45, %v112_v38  ;;  %v123_v49 = vsel %vm344_vm4, %v121_v47, %v113_v39 }
  0xa3   :  { %v124_v50 = vsel %vm351_vm5, %v118_v44, %v122_v48  ;;  %v125_v51 = vsel %vm351_vm5, %v119_v46, %v123_v49 }
  0xa4   :  { %v126_v52 = vrot.slane %v124_v50, 1  ;;  %v128_v53 = vrot.slane %v124_v50, 7  ;;  %v127_v54 = vrot.slane %v125_v51, 1  ;;  %v129_v55 = vrot.slane %v125_v51, 7 }
  0xa6   :  { %v130_v56 = vmax.f32 %v124_v50, %v126_v52  ;;  %v132_v57 = vmin.f32 %v124_v50, %v128_v53  ;;  %v131_v58 = vmax.f32 %v125_v51, %v127_v54  ;;  %v133_v59 = vmin.f32 %v125_v51, %v129_v55 }
  0xa7   :  { %v315_v52 = vmov 1024.0  }
  0xa8   :  { %v134_v60 = vsel %vm365_vm7, %v132_v57, %v124_v50  ;;  %v135_v61 = vsel %vm365_vm7, %v133_v59, %v125_v51  ;;  %242 = vrcp.f32 %v315_v52 }
  0xa9   :  { %v136_v62 = vsel %vm372_vm8, %v130_v56, %v134_v60  ;;  %v137_v63 = vsel %vm372_vm8, %v131_v58, %v135_v61 }
  0xaa   :  { %v138_v0 = vrot.slane %v136_v62, 1  ;;  %v139_v1 = vrot.slane %v137_v63, 1  ;;  %v140_v2 = vrot.slane %v136_v62, 7  ;;  %v141_v3 = vrot.slane %v137_v63, 7 }
  0xac   :  { %v142_v4 = vmax.f32 %v136_v62, %v138_v0  ;;  %v143_v5 = vmax.f32 %v137_v63, %v139_v1  ;;  %v144_v6 = vmin.f32 %v136_v62, %v140_v2  ;;  %v145_v7 = vmin.f32 %v137_v63, %v141_v3 }
  0xae   :  { %v146_v8 = vsel %vm344_vm4, %v144_v6, %v136_v62  ;;  %v147_v9 = vsel %vm344_vm4, %v145_v7, %v137_v63  ;;  %v243_v53 = vpop.eup %242 }
  0xaf   :  { %v148_v10 = vsel %vm351_vm5, %v142_v4, %v146_v8  ;;  %v149_v11 = vsel %vm351_vm5, %v143_v5, %v147_v9  ;;  %v198_v54 = vmul.f32 1024.0, %v243_v53  ;;  %vm202_vm9 = vweird.f32 %v243_v53 }
  0xb0   :  { %v150_v12 = vrot.slane %v148_v10, 1  ;;  %v151_v13 = vrot.slane %v149_v11, 1  ;;  %v152_v14 = vrot.slane %v148_v10, 7  ;;  %v153_v15 = vrot.slane %v149_v11, 7 }
  0xb1   :  { %v199_v55 = vsub.f32 1.0, %v198_v54 }
  0xb2   :  { %v154_v18 = vmax.f32 %v148_v10, %v150_v12  ;;  %v155_v19 = vmax.f32 %v149_v11, %v151_v13  ;;  %v156_v20 = vmin.f32 %v148_v10, %v152_v14  ;;  %v157_v21 = vmin.f32 %v149_v11, %v153_v15 }
  0xb3   :  { %v200_v59 = vmul.f32 %v243_v53, %v199_v55 }
  0xb4   :  { %v158_v22 = vsel %vm365_vm7, %v156_v20, %v148_v10  ;;  %v159_v23 = vsel %vm365_vm7, %v157_v21, %v149_v11 }
  0xb5   :  { %v160_v24 = vsel %vm372_vm8, %v154_v18, %v158_v22  ;;  %v161_v25 = vsel %vm372_vm8, %v155_v19, %v159_v23  ;;  %v201_v61 = vadd.f32 %v243_v53, %v200_v59 }
  0xb6   :  { %v162_v26 = vrot.slane %v160_v24, 1  ;;  %v163_v27 = vrot.slane %v161_v25, 1  ;;  %v164_v28 = vrot.slane %v160_v24, 7  ;;  %v165_v29 = vrot.slane %v161_v25, 7 }
  0xb7   :  { %v203_v31 = vsel %vm202_vm9, %v243_v53, %v201_v61 }
  0xb8   :  { %v166_v32 = vmax.f32 %v160_v24, %v162_v26  ;;  %v167_v33 = vmax.f32 %v161_v25, %v163_v27  ;;  %v168_v34 = vmin.f32 %v160_v24, %v164_v28  ;;  %v169_v35 = vmin.f32 %v161_v25, %v165_v29 }
  0xba   :  { %v170_v36 = vsel %vm344_vm4, %v168_v34, %v160_v24  ;;  %v171_v37 = vsel %vm344_vm4, %v169_v35, %v161_v25 }
  0xbb   :  { %v172_v38 = vsel %vm351_vm5, %v166_v32, %v170_v36  ;;  %v173_v39 = vsel %vm351_vm5, %v167_v33, %v171_v37 }
  0xbc   :  { %v174_v40 = vrot.slane %v172_v38, 1  ;;  %v175_v41 = vrot.slane %v173_v39, 1  ;;  %v176_v42 = vrot.slane %v172_v38, 7  ;;  %v177_v43 = vrot.slane %v173_v39, 7 }
  0xbe   :  { %v178_v44 = vmax.f32 %v172_v38, %v174_v40  ;;  %v179_v45 = vmax.f32 %v173_v39, %v175_v41  ;;  %v180_v46 = vmin.f32 %v172_v38, %v176_v42  ;;  %v181_v47 = vmin.f32 %v173_v39, %v177_v43 }
  0xc0   :  { %v182_v48 = vsel %vm365_vm7, %v180_v46, %v172_v38  ;;  %v183_v16 = vsel %vm365_vm7, %v181_v47, %v173_v39 }
  0xc1   :  { %v184_v49 = vsel %vm372_vm8, %v178_v44, %v182_v48  ;;  %v185_v17 = vsel %vm372_vm8, %v179_v45, %v183_v16 }
  0xc2   :  { %v186_v50 = vsub.f32 %v184_v49, %v185_v17 }
  0xc4   :  { %v187_v51 = vmul.f32 %v186_v50, %v186_v50 }
  0xc6   :  { %188 = vadd.xlane.f32.xlu0 %v187_v51 }
 0x139   :  { %v189_v56 = vpop.xlane.xlu0 %188 }
 0x13a   :  { %v190_v57 = vrot.slane %v189_v56, 4 }
 0x13c   :  { %v191_v58 = vadd.f32 %v190_v57, %v189_v56 }
 0x13e   :  { %v192_v30 = vrot.slane %v191_v58, 2 }
 0x140   :  { %v193_v60 = vadd.f32 %v192_v30, %v191_v58 }
 0x142   :  { %v194_v62 = vrot.slane %v193_v60, 1 }
 0x144   :  { %v195_v63 = vadd.f32 %v194_v62, %v193_v60 }
 0x146   :  { %231 = vpush %v195_v63 }
 0x147   :  { %233 = vpush %v203_v31 }
 0x177   :  { %s232_s22 = spop %231 }
 0x178   :  { %s234_s23 = spop %233 }
 0x179   :  { %s205_s24 = smul.f32 %s234_s23, %s232_s22 }
 0x17b   :  { %207 = sst [smem:[#allocation7]] %s205_s24 }
 0x17c   :  { %216 = dma.smem_to_hbm %s316_s25, 16, %s214_s21, [#allocation4]  }
 0x17d   :  { %308 = dma.done.wait [#allocation4], 16  }
 0x17e   :  { %309 = vsyncadd [#allocation4], 4294967280 }
 0x17f   :  { %221 = sfence }
 0x180   :  { %222 = vsyncpa [#allocation3], 1 }
 0x181   :  { %223 = vsyncpa [#allocation6], 1 }
 0x182   :  { %224 = vsyncpa [#allocation4], 1 }

</bundles_post_ra>
